<compile_context>
chip_gen: v7x
topology: tpu7x:2x2x1
jax: 0.10.0
libtpu: 0.0.40
codegen_flags: <defaults>
</compile_context>

<pallas_src>
import jax
import jax.numpy as jnp
from jax.experimental import pallas as pl
from jax.experimental.pallas import tpu as pltpu

KW = 4           # conv kernel size (fixed by the module)
PADW = 1         # conv padding (fixed by the module)
LEAKY_SLOPE = 0.2
BN_EPS = 1e-5    # PyTorch BatchNorm2d default


# --------------------------------------------------------------------------
# Fused conv + (folded BN / bias) + activation kernel.
#
# One grid step = one batch element.  Inputs:
#   phase_refs[p]: (1, HY, WY, C_in)  phase view of the zero-padded activation
#   w_ref:         (16, C_in, C_out)  per-tap weights, BN scale pre-folded
#   shift_ref:     (1, C_out)         f32 per-channel shift (bias / BN shift)
#   o_ref:         (1, OH, OW, C_out) output tile
#
# The 16 (kh,kw) taps are accumulated in f32; all dynamic indexing is on the
# outer (non-lane/sublane) dims, so no strided/masked vector accesses.
# --------------------------------------------------------------------------
def _make_conv_kernel(n_phases, taps, OH, OW, C_out, act):
    def kernel(*refs):
        phase_refs = refs[:n_phases]
        w_ref = refs[n_phases]
        shift_ref = refs[n_phases + 1]
        o_ref = refs[n_phases + 2]

        w_all = w_ref[...]          # (16, C_in, C_out), compute dtype
        shift = shift_ref[...]      # (1, C_out), f32

        def row_body(oh, carry):
            acc = jnp.zeros((OW, C_out), jnp.float32)
            for t, (pidx, a, b) in enumerate(taps):
                # Row (oh + a) of phase pidx: dynamic index on an outer dim.
                row = phase_refs[pidx][0, oh + a]          # (WY, C_in)
                x_tap = row[b:b + OW, :]                   # (OW, C_in), static slice
                acc = acc + jnp.dot(x_tap, w_all[t],
                                    preferred_element_type=jnp.float32)
            y = acc + shift
            if act == "leaky_relu":
                y = jnp.where(y >= 0.0, y, LEAKY_SLOPE * y)
            elif act == "sigmoid":
                y = jax.nn.sigmoid(y)
            o_ref[0, oh, :, :] = y.astype(o_ref.dtype)
            return carry

        jax.lax.fori_loop(0, OH, row_body, 0)

    return kernel


# --------------------------------------------------------------------------
# Wrapper for one Conv2d(k=4, pad=1, stride s) + folded BN/bias + activation.
# --------------------------------------------------------------------------
def _conv_layer(x_nhwc, weight, scale, shift, stride, act,
                compute_dtype, out_dtype):
    B, H, W, C_in = x_nhwc.shape
    C_out = weight.shape[0]
    OH = (H + 2 * PADW - KW) // stride + 1
    OW = (W + 2 * PADW - KW) // stride + 1
    n_a = KW // stride                      # taps per phase along each axis
    HY, WY = OH + n_a - 1, OW + n_a - 1     # phase-view extent actually needed

    # Zero-pad by 1 pixel (tiny) and build the stride^2 phase views (1x data,
    # handled by XLA outside the kernel -- NOT the 16x im2col inflation).
    xp = jnp.pad(x_nhwc.astype(compute_dtype),
                 ((0, 0), (PADW, PADW), (PADW, PADW), (0, 0)))
    if stride == 1:
        phase_pq = [(0, 0)]
        phases = [xp[:, :HY, :WY, :]]
    else:
        phase_pq = [(p, q) for p in range(stride) for q in range(stride)]
        phases = [xp[:, p::stride, q::stride, :][:, :HY, :WY, :]
                  for (p, q) in phase_pq]

    # Per-tap weights with the per-channel scale folded in:
    #   w_tap[(p,q,a,b)] = weight[:, :, s*a+p, s*b+q].T * scale
    taps = []
    w_list = []
    for pidx, (p, q) in enumerate(phase_pq):
        for a in range(n_a):
            for b in range(n_a):
                kh, kw = stride * a + p, stride * b + q
                taps.append((pidx, a, b))
                w_list.append(weight[:, :, kh, kw].T * scale[None, :])
    w_taps = jnp.stack(w_list, axis=0).astype(compute_dtype)   # (16, C_in, C_out)
    shift2d = shift.reshape(1, C_out).astype(jnp.float32)

    kernel = _make_conv_kernel(len(phases), tuple(taps), OH, OW, C_out, act)

    in_specs = (
        [pl.BlockSpec((1, HY, WY, C_in), lambda bidx: (bidx, 0, 0, 0))] * len(phases)
        + [pl.BlockSpec((KW * KW, C_in, C_out), lambda bidx: (0, 0, 0)),   # resident
           pl.BlockSpec((1, C_out), lambda bidx: (0, 0))]                  # resident
    )

    return pl.pallas_call(
        kernel,
        out_shape=jax.ShapeDtypeStruct((B, OH, OW, C_out), out_dtype),
        grid=(B,),
        in_specs=in_specs,
        out_specs=pl.BlockSpec((1, OH, OW, C_out), lambda bidx: (bidx, 0, 0, 0)),
        compiler_params=pltpu.CompilerParams(
            dimension_semantics=("parallel",),
            vmem_limit_bytes=32 * 1024 * 1024),
    )(*phases, w_taps, shift2d)


# --------------------------------------------------------------------------
# Full NLayerDiscriminator forward.  Input/output in PyTorch NCHW layout.
# --------------------------------------------------------------------------
def nlayer_discriminator_forward(x_nchw, params, use_sigmoid=False,
                                 compute_dtype=jnp.bfloat16):
    y = jnp.transpose(x_nchw, (0, 2, 3, 1))            # -> NHWC
    layers = params["layers"]
    for i, layer in enumerate(layers):
        c_out = layer["weight"].shape[0]
        if layer["bn"] is not None:
            bn = layer["bn"]
            scale = bn["gamma"] * jax.lax.rsqrt(bn["var"] + BN_EPS)
            shift = bn["beta"] - bn["mean"] * scale
        else:
            scale = jnp.ones((c_out,), jnp.float32)
            shift = layer["bias"]
        is_last = i == len(layers) - 1
        act = ("sigmoid" if use_sigmoid else "none") if is_last else "leaky_relu"
        out_dtype = jnp.float32 if is_last else compute_dtype
        y = _conv_layer(y, layer["weight"], scale, shift, layer["stride"], act,
                        compute_dtype, out_dtype)
    return jnp.transpose(y, (0, 3, 1, 2)).astype(jnp.float32)   # -> NCHW


# --------------------------------------------------------------------------
# Parameter construction mirroring NLayerDiscriminator.__init__
# --------------------------------------------------------------------------
def init_params(key, input_nc, ndf=8, n_layers=3):
    keys = iter(jax.random.split(key, 4 * (n_layers + 3)))

    def conv_w(k, c_out, c_in):
        return 0.1 * jax.random.normal(k, (c_out, c_in, KW, KW), jnp.float32)

    def bn_params(k, c):
        k1, k2, k3, k4 = jax.random.split(k, 4)
        return {
            "gamma": 1.0 + 0.1 * jax.random.normal(k1, (c,), jnp.float32),
            "beta": 0.05 * jax.random.normal(k2, (c,), jnp.float32),
            "mean": 0.1 * jax.random.normal(k3, (c,), jnp.float32),
            "var": 0.5 + jax.random.uniform(k4, (c,), jnp.float32),
        }

    layers = []
    # Conv(input_nc -> ndf, s=2) + LeakyReLU   (has bias, no norm)
    layers.append({"weight": conv_w(next(keys), ndf, input_nc),
                   "bias": 0.05 * jax.random.normal(next(keys), (ndf,), jnp.float32),
                   "bn": None, "stride": 2})
    nf_mult = 1
    for n in range(1, n_layers):
        nf_prev, nf_mult = nf_mult, min(2 ** n, 8)
        layers.append({"weight": conv_w(next(keys), ndf * nf_mult, ndf * nf_prev),
                       "bias": None,
                       "bn": bn_params(next(keys), ndf * nf_mult),
                       "stride": 2})
    nf_prev, nf_mult = nf_mult, min(2 ** n_layers, 8)
    layers.append({"weight": conv_w(next(keys), ndf * nf_mult, ndf * nf_prev),
                   "bias": None,
                   "bn": bn_params(next(keys), ndf * nf_mult),
                   "stride": 1})
    # Final Conv(ndf*nf_mult -> 1, s=1)   (has bias, no norm, no activation)
    layers.append({"weight": conv_w(next(keys), 1, ndf * nf_mult),
                   "bias": 0.05 * jax.random.normal(next(keys), (1,), jnp.float32),
                   "bn": None, "stride": 1})
    return {"layers": layers}


# --------------------------------------------------------------------------
# Pure-JAX reference (lax.conv) mirroring the PyTorch forward
# --------------------------------------------------------------------------
def _reference(x_nchw, params, use_sigmoid=False):
    y = x_nchw.astype(jnp.float32)
    layers = params["layers"]
    for i, layer in enumerate(layers):
        s = layer["stride"]
        y = jax.lax.conv_general_dilated(
            y, layer["weight"],
            window_strides=(s, s),
            padding=((PADW, PADW), (PADW, PADW)),
            dimension_numbers=("NCHW", "OIHW", "NCHW"))
        if layer["bias"] is not None:
            y = y + layer["bias"][None, :, None, None]
        if layer["bn"] is not None:
            bn = layer["bn"]
            inv = jax.lax.rsqrt(bn["var"] + BN_EPS)
            y = (y - bn["mean"][None, :, None, None]) * inv[None, :, None, None]
            y = y * bn["gamma"][None, :, None, None] + bn["beta"][None, :, None, None]
        if i < len(layers) - 1:
            y = jnp.where(y >= 0.0, y, LEAKY_SLOPE * y)
        elif use_sigmoid:
            y = jax.nn.sigmoid(y)
    return y


if __name__ == "__main__":
    B, input_nc, ndf, n_layers, H = 2, 3, 8, 3, 32
    key = jax.random.PRNGKey(0)
    k_in, k_par = jax.random.split(key)

    x = jax.random.normal(k_in, (B, input_nc, H, H), jnp.float32)
    params = init_params(k_par, input_nc, ndf=ndf, n_layers=n_layers)

    ref = _reference(x, params, use_sigmoid=False)

    # Strict correctness check: Pallas pipeline in f32.
    out_f32 = jax.block_until_ready(
        nlayer_discriminator_forward(x, params, use_sigmoid=False,
                                     compute_dtype=jnp.float32))
    assert out_f32.shape == ref.shape == (B, 1, 2, 2), (out_f32.shape, ref.shape)
    assert jnp.allclose(out_f32, ref, atol=1e-2, rtol=1e-3), "f32 mismatch vs reference"

    # Performance path: bf16 operands with f32 accumulation (loose tolerance).
    out_bf16 = jax.block_until_ready(
        nlayer_discriminator_forward(x, params, use_sigmoid=False,
                                     compute_dtype=jnp.bfloat16))
    err = float(jnp.max(jnp.abs(out_bf16 - ref)))
    ref_scale = float(jnp.max(jnp.abs(ref)))
    assert err <= 0.1 * (1.0 + ref_scale), (
        f"bf16 path error too large: {err} (ref scale {ref_scale})")

    print("KERNEL_OK")
</pallas_src>

<mosaic_0001>
module attributes {stable_mosaic.version = 11 : i64} {
  func.func @kernel(%arg0: i32, %arg1: memref<1x17x17x3xf32, #tpu.memory_space<vmem>>, %arg2: memref<1x17x17x3xf32, #tpu.memory_space<vmem>>, %arg3: memref<1x17x17x3xf32, #tpu.memory_space<vmem>>, %arg4: memref<1x17x17x3xf32, #tpu.memory_space<vmem>>, %arg5: memref<16x3x8xf32, #tpu.memory_space<vmem>>, %arg6: memref<1x8xf32, #tpu.memory_space<vmem>>, %arg7: memref<1x16x16x8xf32, #tpu.memory_space<vmem>>) attributes {dimension_semantics = [#tpu.dimension_semantics<parallel>], iteration_bounds = array<i64: 2>, scalar_prefetch = 0 : i64, scratch_operands = 0 : i64, tpu.core_type = #tpu.core_type<tc>, window_params = [{transform_indices = @transform_0, window_bounds = array<i64: 1, 17, 17, 3>}, {transform_indices = @transform_1, window_bounds = array<i64: 1, 17, 17, 3>}, {transform_indices = @transform_2, window_bounds = array<i64: 1, 17, 17, 3>}, {transform_indices = @transform_3, window_bounds = array<i64: 1, 17, 17, 3>}, {pipeline_mode = #tpu.pipeline_mode<synchronous>, transform_indices = @transform_4, window_bounds = array<i64: 16, 3, 8>}, {pipeline_mode = #tpu.pipeline_mode<synchronous>, transform_indices = @transform_5, window_bounds = array<i64: 1, 8>}, {transform_indices = @transform_6, window_bounds = array<i64: 1, 16, 16, 8>}]} {
    %c0 = arith.constant 0 : index
    %c0_0 = arith.constant 0 : index
    %c0_1 = arith.constant 0 : index
    %0 = vector.load %arg5[%c0, %c0_0, %c0_1] : memref<16x3x8xf32, #tpu.memory_space<vmem>>, vector<16x3x8xf32>
    %c0_2 = arith.constant 0 : index
    %c0_3 = arith.constant 0 : index
    %1 = vector.load %arg6[%c0_2, %c0_3] : memref<1x8xf32, #tpu.memory_space<vmem>>, vector<1x8xf32>
    %c0_i32 = arith.constant 0 : i32
    %c16_i32 = arith.constant 16 : i32
    %2 = arith.addi %c0_i32, %c16_i32 : i32
    %c1_i32 = arith.constant 1 : i32
    scf.for %arg8 = %c0_i32 to %2 step %c1_i32  : i32 {
      %cst = arith.constant 0.000000e+00 : f32
      %3 = vector.broadcast %cst : f32 to vector<16x8xf32>
      %c0_i32_5 = arith.constant 0 : i32
      %4 = arith.addi %arg8, %c0_i32_5 : i32
      %c0_6 = arith.constant 0 : index
      %5 = arith.index_cast %4 : i32 to index
      %c0_7 = arith.constant 0 : index
      %c0_8 = arith.constant 0 : index
      %6 = vector.load %arg1[%c0_6, %5, %c0_7, %c0_8] : memref<1x17x17x3xf32, #tpu.memory_space<vmem>>, vector<1x1x17x3xf32>
      %7 = vector.shape_cast %6 : vector<1x1x17x3xf32> to vector<17x3xf32>
      %8 = vector.extract_strided_slice %7 {offsets = [0, 0], sizes = [16, 3], strides = [1, 1]} : vector<17x3xf32> to vector<16x3xf32>
      %9 = vector.extract_strided_slice %0 {offsets = [0, 0, 0], sizes = [1, 3, 8], strides = [1, 1, 1]} : vector<16x3x8xf32> to vector<1x3x8xf32>
      %10 = vector.shape_cast %9 : vector<1x3x8xf32> to vector<3x8xf32>
      %cst_9 = arith.constant dense<0.000000e+00> : vector<16x8xf32>
      %11 = tpu.matmul %8, %10, %cst_9 {dimension_numbers = #tpu.dot_dimension_numbers<[1], [0], [0], [1], [0, 0, 1, 1], [], []>} : vector<16x3xf32>, vector<3x8xf32>, vector<16x8xf32> -> vector<16x8xf32>
      %12 = arith.addf %3, %11 : vector<16x8xf32>
      %c0_i32_10 = arith.constant 0 : i32
      %13 = arith.addi %arg8, %c0_i32_10 : i32
      %c0_11 = arith.constant 0 : index
      %14 = arith.index_cast %13 : i32 to index
      %c0_12 = arith.constant 0 : index
      %c0_13 = arith.constant 0 : index
      %15 = vector.load %arg1[%c0_11, %14, %c0_12, %c0_13] : memref<1x17x17x3xf32, #tpu.memory_space<vmem>>, vector<1x1x17x3xf32>
      %16 = vector.shape_cast %15 : vector<1x1x17x3xf32> to vector<17x3xf32>
      %17 = vector.extract_strided_slice %16 {offsets = [1, 0], sizes = [16, 3], strides = [1, 1]} : vector<17x3xf32> to vector<16x3xf32>
      %18 = vector.extract_strided_slice %0 {offsets = [1, 0, 0], sizes = [1, 3, 8], strides = [1, 1, 1]} : vector<16x3x8xf32> to vector<1x3x8xf32>
      %19 = vector.shape_cast %18 : vector<1x3x8xf32> to vector<3x8xf32>
      %cst_14 = arith.constant dense<0.000000e+00> : vector<16x8xf32>
      %20 = tpu.matmul %17, %19, %cst_14 {dimension_numbers = #tpu.dot_dimension_numbers<[1], [0], [0], [1], [0, 0, 1, 1], [], []>} : vector<16x3xf32>, vector<3x8xf32>, vector<16x8xf32> -> vector<16x8xf32>
      %21 = arith.addf %12, %20 : vector<16x8xf32>
      %c1_i32_15 = arith.constant 1 : i32
      %22 = arith.addi %arg8, %c1_i32_15 : i32
      %c0_16 = arith.constant 0 : index
      %23 = arith.index_cast %22 : i32 to index
      %c0_17 = arith.constant 0 : index
      %c0_18 = arith.constant 0 : index
      %24 = vector.load %arg1[%c0_16, %23, %c0_17, %c0_18] : memref<1x17x17x3xf32, #tpu.memory_space<vmem>>, vector<1x1x17x3xf32>
      %25 = vector.shape_cast %24 : vector<1x1x17x3xf32> to vector<17x3xf32>
      %26 = vector.extract_strided_slice %25 {offsets = [0, 0], sizes = [16, 3], strides = [1, 1]} : vector<17x3xf32> to vector<16x3xf32>
      %27 = vector.extract_strided_slice %0 {offsets = [2, 0, 0], sizes = [1, 3, 8], strides = [1, 1, 1]} : vector<16x3x8xf32> to vector<1x3x8xf32>
      %28 = vector.shape_cast %27 : vector<1x3x8xf32> to vector<3x8xf32>
      %cst_19 = arith.constant dense<0.000000e+00> : vector<16x8xf32>
      %29 = tpu.matmul %26, %28, %cst_19 {dimension_numbers = #tpu.dot_dimension_numbers<[1], [0], [0], [1], [0, 0, 1, 1], [], []>} : vector<16x3xf32>, vector<3x8xf32>, vector<16x8xf32> -> vector<16x8xf32>
      %30 = arith.addf %21, %29 : vector<16x8xf32>
      %c1_i32_20 = arith.constant 1 : i32
      %31 = arith.addi %arg8, %c1_i32_20 : i32
      %c0_21 = arith.constant 0 : index
      %32 = arith.index_cast %31 : i32 to index
      %c0_22 = arith.constant 0 : index
      %c0_23 = arith.constant 0 : index
      %33 = vector.load %arg1[%c0_21, %32, %c0_22, %c0_23] : memref<1x17x17x3xf32, #tpu.memory_space<vmem>>, vector<1x1x17x3xf32>
      %34 = vector.shape_cast %33 : vector<1x1x17x3xf32> to vector<17x3xf32>
      %35 = vector.extract_strided_slice %34 {offsets = [1, 0], sizes = [16, 3], strides = [1, 1]} : vector<17x3xf32> to vector<16x3xf32>
      %36 = vector.extract_strided_slice %0 {offsets = [3, 0, 0], sizes = [1, 3, 8], strides = [1, 1, 1]} : vector<16x3x8xf32> to vector<1x3x8xf32>
      %37 = vector.shape_cast %36 : vector<1x3x8xf32> to vector<3x8xf32>
      %cst_24 = arith.constant dense<0.000000e+00> : vector<16x8xf32>
      %38 = tpu.matmul %35, %37, %cst_24 {dimension_numbers = #tpu.dot_dimension_numbers<[1], [0], [0], [1], [0, 0, 1, 1], [], []>} : vector<16x3xf32>, vector<3x8xf32>, vector<16x8xf32> -> vector<16x8xf32>
      %39 = arith.addf %30, %38 : vector<16x8xf32>
      %c0_i32_25 = arith.constant 0 : i32
      %40 = arith.addi %arg8, %c0_i32_25 : i32
      %c0_26 = arith.constant 0 : index
      %41 = arith.index_cast %40 : i32 to index
      %c0_27 = arith.constant 0 : index
      %c0_28 = arith.constant 0 : index
      %42 = vector.load %arg2[%c0_26, %41, %c0_27, %c0_28] : memref<1x17x17x3xf32, #tpu.memory_space<vmem>>, vector<1x1x17x3xf32>
      %43 = vector.shape_cast %42 : vector<1x1x17x3xf32> to vector<17x3xf32>
      %44 = vector.extract_strided_slice %43 {offsets = [0, 0], sizes = [16, 3], strides = [1, 1]} : vector<17x3xf32> to vector<16x3xf32>
      %45 = vector.extract_strided_slice %0 {offsets = [4, 0, 0], sizes = [1, 3, 8], strides = [1, 1, 1]} : vector<16x3x8xf32> to vector<1x3x8xf32>
      %46 = vector.shape_cast %45 : vector<1x3x8xf32> to vector<3x8xf32>
      %cst_29 = arith.constant dense<0.000000e+00> : vector<16x8xf32>
      %47 = tpu.matmul %44, %46, %cst_29 {dimension_numbers = #tpu.dot_dimension_numbers<[1], [0], [0], [1], [0, 0, 1, 1], [], []>} : vector<16x3xf32>, vector<3x8xf32>, vector<16x8xf32> -> vector<16x8xf32>
      %48 = arith.addf %39, %47 : vector<16x8xf32>
      %c0_i32_30 = arith.constant 0 : i32
      %49 = arith.addi %arg8, %c0_i32_30 : i32
      %c0_31 = arith.constant 0 : index
      %50 = arith.index_cast %49 : i32 to index
      %c0_32 = arith.constant 0 : index
      %c0_33 = arith.constant 0 : index
      %51 = vector.load %arg2[%c0_31, %50, %c0_32, %c0_33] : memref<1x17x17x3xf32, #tpu.memory_space<vmem>>, vector<1x1x17x3xf32>
      %52 = vector.shape_cast %51 : vector<1x1x17x3xf32> to vector<17x3xf32>
      %53 = vector.extract_strided_slice %52 {offsets = [1, 0], sizes = [16, 3], strides = [1, 1]} : vector<17x3xf32> to vector<16x3xf32>
      %54 = vector.extract_strided_slice %0 {offsets = [5, 0, 0], sizes = [1, 3, 8], strides = [1, 1, 1]} : vector<16x3x8xf32> to vector<1x3x8xf32>
      %55 = vector.shape_cast %54 : vector<1x3x8xf32> to vector<3x8xf32>
      %cst_34 = arith.constant dense<0.000000e+00> : vector<16x8xf32>
      %56 = tpu.matmul %53, %55, %cst_34 {dimension_numbers = #tpu.dot_dimension_numbers<[1], [0], [0], [1], [0, 0, 1, 1], [], []>} : vector<16x3xf32>, vector<3x8xf32>, vector<16x8xf32> -> vector<16x8xf32>
      %57 = arith.addf %48, %56 : vector<16x8xf32>
      %c1_i32_35 = arith.constant 1 : i32
      %58 = arith.addi %arg8, %c1_i32_35 : i32
      %c0_36 = arith.constant 0 : index
      %59 = arith.index_cast %58 : i32 to index
      %c0_37 = arith.constant 0 : index
      %c0_38 = arith.constant 0 : index
      %60 = vector.load %arg2[%c0_36, %59, %c0_37, %c0_38] : memref<1x17x17x3xf32, #tpu.memory_space<vmem>>, vector<1x1x17x3xf32>
      %61 = vector.shape_cast %60 : vector<1x1x17x3xf32> to vector<17x3xf32>
      %62 = vector.extract_strided_slice %61 {offsets = [0, 0], sizes = [16, 3], strides = [1, 1]} : vector<17x3xf32> to vector<16x3xf32>
      %63 = vector.extract_strided_slice %0 {offsets = [6, 0, 0], sizes = [1, 3, 8], strides = [1, 1, 1]} : vector<16x3x8xf32> to vector<1x3x8xf32>
      %64 = vector.shape_cast %63 : vector<1x3x8xf32> to vector<3x8xf32>
      %cst_39 = arith.constant dense<0.000000e+00> : vector<16x8xf32>
      %65 = tpu.matmul %62, %64, %cst_39 {dimension_numbers = #tpu.dot_dimension_numbers<[1], [0], [0], [1], [0, 0, 1, 1], [], []>} : vector<16x3xf32>, vector<3x8xf32>, vector<16x8xf32> -> vector<16x8xf32>
      %66 = arith.addf %57, %65 : vector<16x8xf32>
      %c1_i32_40 = arith.constant 1 : i32
      %67 = arith.addi %arg8, %c1_i32_40 : i32
      %c0_41 = arith.constant 0 : index
      %68 = arith.index_cast %67 : i32 to index
      %c0_42 = arith.constant 0 : index
      %c0_43 = arith.constant 0 : index
      %69 = vector.load %arg2[%c0_41, %68, %c0_42, %c0_43] : memref<1x17x17x3xf32, #tpu.memory_space<vmem>>, vector<1x1x17x3xf32>
      %70 = vector.shape_cast %69 : vector<1x1x17x3xf32> to vector<17x3xf32>
      %71 = vector.extract_strided_slice %70 {offsets = [1, 0], sizes = [16, 3], strides = [1, 1]} : vector<17x3xf32> to vector<16x3xf32>
      %72 = vector.extract_strided_slice %0 {offsets = [7, 0, 0], sizes = [1, 3, 8], strides = [1, 1, 1]} : vector<16x3x8xf32> to vector<1x3x8xf32>
      %73 = vector.shape_cast %72 : vector<1x3x8xf32> to vector<3x8xf32>
      %cst_44 = arith.constant dense<0.000000e+00> : vector<16x8xf32>
      %74 = tpu.matmul %71, %73, %cst_44 {dimension_numbers = #tpu.dot_dimension_numbers<[1], [0], [0], [1], [0, 0, 1, 1], [], []>} : vector<16x3xf32>, vector<3x8xf32>, vector<16x8xf32> -> vector<16x8xf32>
      %75 = arith.addf %66, %74 : vector<16x8xf32>
      %c0_i32_45 = arith.constant 0 : i32
      %76 = arith.addi %arg8, %c0_i32_45 : i32
      %c0_46 = arith.constant 0 : index
      %77 = arith.index_cast %76 : i32 to index
      %c0_47 = arith.constant 0 : index
      %c0_48 = arith.constant 0 : index
      %78 = vector.load %arg3[%c0_46, %77, %c0_47, %c0_48] : memref<1x17x17x3xf32, #tpu.memory_space<vmem>>, vector<1x1x17x3xf32>
      %79 = vector.shape_cast %78 : vector<1x1x17x3xf32> to vector<17x3xf32>
      %80 = vector.extract_strided_slice %79 {offsets = [0, 0], sizes = [16, 3], strides = [1, 1]} : vector<17x3xf32> to vector<16x3xf32>
      %81 = vector.extract_strided_slice %0 {offsets = [8, 0, 0], sizes = [1, 3, 8], strides = [1, 1, 1]} : vector<16x3x8xf32> to vector<1x3x8xf32>
      %82 = vector.shape_cast %81 : vector<1x3x8xf32> to vector<3x8xf32>
      %cst_49 = arith.constant dense<0.000000e+00> : vector<16x8xf32>
      %83 = tpu.matmul %80, %82, %cst_49 {dimension_numbers = #tpu.dot_dimension_numbers<[1], [0], [0], [1], [0, 0, 1, 1], [], []>} : vector<16x3xf32>, vector<3x8xf32>, vector<16x8xf32> -> vector<16x8xf32>
      %84 = arith.addf %75, %83 : vector<16x8xf32>
      %c0_i32_50 = arith.constant 0 : i32
      %85 = arith.addi %arg8, %c0_i32_50 : i32
      %c0_51 = arith.constant 0 : index
      %86 = arith.index_cast %85 : i32 to index
      %c0_52 = arith.constant 0 : index
      %c0_53 = arith.constant 0 : index
      %87 = vector.load %arg3[%c0_51, %86, %c0_52, %c0_53] : memref<1x17x17x3xf32, #tpu.memory_space<vmem>>, vector<1x1x17x3xf32>
      %88 = vector.shape_cast %87 : vector<1x1x17x3xf32> to vector<17x3xf32>
      %89 = vector.extract_strided_slice %88 {offsets = [1, 0], sizes = [16, 3], strides = [1, 1]} : vector<17x3xf32> to vector<16x3xf32>
      %90 = vector.extract_strided_slice %0 {offsets = [9, 0, 0], sizes = [1, 3, 8], strides = [1, 1, 1]} : vector<16x3x8xf32> to vector<1x3x8xf32>
      %91 = vector.shape_cast %90 : vector<1x3x8xf32> to vector<3x8xf32>
      %cst_54 = arith.constant dense<0.000000e+00> : vector<16x8xf32>
      %92 = tpu.matmul %89, %91, %cst_54 {dimension_numbers = #tpu.dot_dimension_numbers<[1], [0], [0], [1], [0, 0, 1, 1], [], []>} : vector<16x3xf32>, vector<3x8xf32>, vector<16x8xf32> -> vector<16x8xf32>
      %93 = arith.addf %84, %92 : vector<16x8xf32>
      %c1_i32_55 = arith.constant 1 : i32
      %94 = arith.addi %arg8, %c1_i32_55 : i32
      %c0_56 = arith.constant 0 : index
      %95 = arith.index_cast %94 : i32 to index
      %c0_57 = arith.constant 0 : index
      %c0_58 = arith.constant 0 : index
      %96 = vector.load %arg3[%c0_56, %95, %c0_57, %c0_58] : memref<1x17x17x3xf32, #tpu.memory_space<vmem>>, vector<1x1x17x3xf32>
      %97 = vector.shape_cast %96 : vector<1x1x17x3xf32> to vector<17x3xf32>
      %98 = vector.extract_strided_slice %97 {offsets = [0, 0], sizes = [16, 3], strides = [1, 1]} : vector<17x3xf32> to vector<16x3xf32>
      %99 = vector.extract_strided_slice %0 {offsets = [10, 0, 0], sizes = [1, 3, 8], strides = [1, 1, 1]} : vector<16x3x8xf32> to vector<1x3x8xf32>
      %100 = vector.shape_cast %99 : vector<1x3x8xf32> to vector<3x8xf32>
      %cst_59 = arith.constant dense<0.000000e+00> : vector<16x8xf32>
      %101 = tpu.matmul %98, %100, %cst_59 {dimension_numbers = #tpu.dot_dimension_numbers<[1], [0], [0], [1], [0, 0, 1, 1], [], []>} : vector<16x3xf32>, vector<3x8xf32>, vector<16x8xf32> -> vector<16x8xf32>
      %102 = arith.addf %93, %101 : vector<16x8xf32>
      %c1_i32_60 = arith.constant 1 : i32
      %103 = arith.addi %arg8, %c1_i32_60 : i32
      %c0_61 = arith.constant 0 : index
      %104 = arith.index_cast %103 : i32 to index
      %c0_62 = arith.constant 0 : index
      %c0_63 = arith.constant 0 : index
      %105 = vector.load %arg3[%c0_61, %104, %c0_62, %c0_63] : memref<1x17x17x3xf32, #tpu.memory_space<vmem>>, vector<1x1x17x3xf32>
      %106 = vector.shape_cast %105 : vector<1x1x17x3xf32> to vector<17x3xf32>
      %107 = vector.extract_strided_slice %106 {offsets = [1, 0], sizes = [16, 3], strides = [1, 1]} : vector<17x3xf32> to vector<16x3xf32>
      %108 = vector.extract_strided_slice %0 {offsets = [11, 0, 0], sizes = [1, 3, 8], strides = [1, 1, 1]} : vector<16x3x8xf32> to vector<1x3x8xf32>
      %109 = vector.shape_cast %108 : vector<1x3x8xf32> to vector<3x8xf32>
      %cst_64 = arith.constant dense<0.000000e+00> : vector<16x8xf32>
      %110 = tpu.matmul %107, %109, %cst_64 {dimension_numbers = #tpu.dot_dimension_numbers<[1], [0], [0], [1], [0, 0, 1, 1], [], []>} : vector<16x3xf32>, vector<3x8xf32>, vector<16x8xf32> -> vector<16x8xf32>
      %111 = arith.addf %102, %110 : vector<16x8xf32>
      %c0_i32_65 = arith.constant 0 : i32
      %112 = arith.addi %arg8, %c0_i32_65 : i32
      %c0_66 = arith.constant 0 : index
      %113 = arith.index_cast %112 : i32 to index
      %c0_67 = arith.constant 0 : index
      %c0_68 = arith.constant 0 : index
      %114 = vector.load %arg4[%c0_66, %113, %c0_67, %c0_68] : memref<1x17x17x3xf32, #tpu.memory_space<vmem>>, vector<1x1x17x3xf32>
      %115 = vector.shape_cast %114 : vector<1x1x17x3xf32> to vector<17x3xf32>
      %116 = vector.extract_strided_slice %115 {offsets = [0, 0], sizes = [16, 3], strides = [1, 1]} : vector<17x3xf32> to vector<16x3xf32>
      %117 = vector.extract_strided_slice %0 {offsets = [12, 0, 0], sizes = [1, 3, 8], strides = [1, 1, 1]} : vector<16x3x8xf32> to vector<1x3x8xf32>
      %118 = vector.shape_cast %117 : vector<1x3x8xf32> to vector<3x8xf32>
      %cst_69 = arith.constant dense<0.000000e+00> : vector<16x8xf32>
      %119 = tpu.matmul %116, %118, %cst_69 {dimension_numbers = #tpu.dot_dimension_numbers<[1], [0], [0], [1], [0, 0, 1, 1], [], []>} : vector<16x3xf32>, vector<3x8xf32>, vector<16x8xf32> -> vector<16x8xf32>
      %120 = arith.addf %111, %119 : vector<16x8xf32>
      %c0_i32_70 = arith.constant 0 : i32
      %121 = arith.addi %arg8, %c0_i32_70 : i32
      %c0_71 = arith.constant 0 : index
      %122 = arith.index_cast %121 : i32 to index
      %c0_72 = arith.constant 0 : index
      %c0_73 = arith.constant 0 : index
      %123 = vector.load %arg4[%c0_71, %122, %c0_72, %c0_73] : memref<1x17x17x3xf32, #tpu.memory_space<vmem>>, vector<1x1x17x3xf32>
      %124 = vector.shape_cast %123 : vector<1x1x17x3xf32> to vector<17x3xf32>
      %125 = vector.extract_strided_slice %124 {offsets = [1, 0], sizes = [16, 3], strides = [1, 1]} : vector<17x3xf32> to vector<16x3xf32>
      %126 = vector.extract_strided_slice %0 {offsets = [13, 0, 0], sizes = [1, 3, 8], strides = [1, 1, 1]} : vector<16x3x8xf32> to vector<1x3x8xf32>
      %127 = vector.shape_cast %126 : vector<1x3x8xf32> to vector<3x8xf32>
      %cst_74 = arith.constant dense<0.000000e+00> : vector<16x8xf32>
      %128 = tpu.matmul %125, %127, %cst_74 {dimension_numbers = #tpu.dot_dimension_numbers<[1], [0], [0], [1], [0, 0, 1, 1], [], []>} : vector<16x3xf32>, vector<3x8xf32>, vector<16x8xf32> -> vector<16x8xf32>
      %129 = arith.addf %120, %128 : vector<16x8xf32>
      %c1_i32_75 = arith.constant 1 : i32
      %130 = arith.addi %arg8, %c1_i32_75 : i32
      %c0_76 = arith.constant 0 : index
      %131 = arith.index_cast %130 : i32 to index
      %c0_77 = arith.constant 0 : index
      %c0_78 = arith.constant 0 : index
      %132 = vector.load %arg4[%c0_76, %131, %c0_77, %c0_78] : memref<1x17x17x3xf32, #tpu.memory_space<vmem>>, vector<1x1x17x3xf32>
      %133 = vector.shape_cast %132 : vector<1x1x17x3xf32> to vector<17x3xf32>
      %134 = vector.extract_strided_slice %133 {offsets = [0, 0], sizes = [16, 3], strides = [1, 1]} : vector<17x3xf32> to vector<16x3xf32>
      %135 = vector.extract_strided_slice %0 {offsets = [14, 0, 0], sizes = [1, 3, 8], strides = [1, 1, 1]} : vector<16x3x8xf32> to vector<1x3x8xf32>
      %136 = vector.shape_cast %135 : vector<1x3x8xf32> to vector<3x8xf32>
      %cst_79 = arith.constant dense<0.000000e+00> : vector<16x8xf32>
      %137 = tpu.matmul %134, %136, %cst_79 {dimension_numbers = #tpu.dot_dimension_numbers<[1], [0], [0], [1], [0, 0, 1, 1], [], []>} : vector<16x3xf32>, vector<3x8xf32>, vector<16x8xf32> -> vector<16x8xf32>
      %138 = arith.addf %129, %137 : vector<16x8xf32>
      %c1_i32_80 = arith.constant 1 : i32
      %139 = arith.addi %arg8, %c1_i32_80 : i32
      %c0_81 = arith.constant 0 : index
      %140 = arith.index_cast %139 : i32 to index
      %c0_82 = arith.constant 0 : index
      %c0_83 = arith.constant 0 : index
      %141 = vector.load %arg4[%c0_81, %140, %c0_82, %c0_83] : memref<1x17x17x3xf32, #tpu.memory_space<vmem>>, vector<1x1x17x3xf32>
      %142 = vector.shape_cast %141 : vector<1x1x17x3xf32> to vector<17x3xf32>
      %143 = vector.extract_strided_slice %142 {offsets = [1, 0], sizes = [16, 3], strides = [1, 1]} : vector<17x3xf32> to vector<16x3xf32>
      %144 = vector.extract_strided_slice %0 {offsets = [15, 0, 0], sizes = [1, 3, 8], strides = [1, 1, 1]} : vector<16x3x8xf32> to vector<1x3x8xf32>
      %145 = vector.shape_cast %144 : vector<1x3x8xf32> to vector<3x8xf32>
      %cst_84 = arith.constant dense<0.000000e+00> : vector<16x8xf32>
      %146 = tpu.matmul %143, %145, %cst_84 {dimension_numbers = #tpu.dot_dimension_numbers<[1], [0], [0], [1], [0, 0, 1, 1], [], []>} : vector<16x3xf32>, vector<3x8xf32>, vector<16x8xf32> -> vector<16x8xf32>
      %147 = arith.addf %138, %146 : vector<16x8xf32>
      %148 = vector.broadcast %1 : vector<1x8xf32> to vector<16x8xf32>
      %149 = arith.addf %147, %148 : vector<16x8xf32>
      %cst_85 = arith.constant 0.000000e+00 : f32
      %150 = vector.broadcast %cst_85 : f32 to vector<16x8xf32>
      %151 = arith.cmpf oge, %149, %150 : vector<16x8xf32>
      %cst_86 = arith.constant 2.000000e-01 : f32
      %152 = vector.broadcast %cst_86 : f32 to vector<16x8xf32>
      %153 = arith.mulf %152, %149 : vector<16x8xf32>
      %154 = arith.select %151, %149, %153 : vector<16x8xi1>, vector<16x8xf32>
      %c0_87 = arith.constant 0 : index
      %155 = arith.index_cast %arg8 : i32 to index
      %c0_88 = arith.constant 0 : index
      %c0_89 = arith.constant 0 : index
      %156 = vector.load %arg7[%c0_87, %155, %c0_88, %c0_89] : memref<1x16x16x8xf32, #tpu.memory_space<vmem>>, vector<1x1x16x8xf32>
      %157 = vector.shape_cast %156 : vector<1x1x16x8xf32> to vector<16x8xf32>
      %158 = vector.shape_cast %154 : vector<16x8xf32> to vector<1x1x16x8xf32>
      tpu.vector_store %arg7[%c0_87, %155, %c0_88, %c0_89], %158 {strides = array<i32>} : memref<1x16x16x8xf32, #tpu.memory_space<vmem>>, vector<1x1x16x8xf32>,
    }
    %c16_i32_4 = arith.constant 16 : i32
    return
  }
  func.func @transform_0(%arg0: i32) -> (i32, i32, i32, i32) {
    %c0_i32 = arith.constant 0 : i32
    %c0_i32_0 = arith.constant 0 : i32
    %c0_i32_1 = arith.constant 0 : i32
    %c0_i32_2 = arith.constant 0 : i32
    return %arg0, %c0_i32, %c0_i32_0, %c0_i32_1 : i32, i32, i32, i32
  }
  func.func @transform_1(%arg0: i32) -> (i32, i32, i32, i32) {
    %c0_i32 = arith.constant 0 : i32
    %c0_i32_0 = arith.constant 0 : i32
    %c0_i32_1 = arith.constant 0 : i32
    %c0_i32_2 = arith.constant 0 : i32
    return %arg0, %c0_i32, %c0_i32_0, %c0_i32_1 : i32, i32, i32, i32
  }
  func.func @transform_2(%arg0: i32) -> (i32, i32, i32, i32) {
    %c0_i32 = arith.constant 0 : i32
    %c0_i32_0 = arith.constant 0 : i32
    %c0_i32_1 = arith.constant 0 : i32
    %c0_i32_2 = arith.constant 0 : i32
    return %arg0, %c0_i32, %c0_i32_0, %c0_i32_1 : i32, i32, i32, i32
  }
  func.func @transform_3(%arg0: i32) -> (i32, i32, i32, i32) {
    %c0_i32 = arith.constant 0 : i32
    %c0_i32_0 = arith.constant 0 : i32
    %c0_i32_1 = arith.constant 0 : i32
    %c0_i32_2 = arith.constant 0 : i32
    return %arg0, %c0_i32, %c0_i32_0, %c0_i32_1 : i32, i32, i32, i32
  }
  func.func @transform_4(%arg0: i32) -> (i32, i32, i32) {
    %c0_i32 = arith.constant 0 : i32
    %c0_i32_0 = arith.constant 0 : i32
    %c0_i32_1 = arith.constant 0 : i32
    %c0_i32_2 = arith.constant 0 : i32
    return %c0_i32, %c0_i32_0, %c0_i32_1 : i32, i32, i32
  }
  func.func @transform_5(%arg0: i32) -> (i32, i32) {
    %c0_i32 = arith.constant 0 : i32
    %c0_i32_0 = arith.constant 0 : i32
    %c0_i32_1 = arith.constant 0 : i32
    return %c0_i32, %c0_i32_0 : i32, i32
  }
  func.func @transform_6(%arg0: i32) -> (i32, i32, i32, i32) {
    %c0_i32 = arith.constant 0 : i32
    %c0_i32_0 = arith.constant 0 : i32
    %c0_i32_1 = arith.constant 0 : i32
    %c0_i32_2 = arith.constant 0 : i32
    return %arg0, %c0_i32, %c0_i32_0, %c0_i32_1 : i32, i32, i32, i32
  }
}

</mosaic_0001>

<bundles_post_ra>
// kernel: tpu_custom_call.1
= control target key start
LH: loop header
LB: loop body
LE: loop exit
PB: predicated region body
PF: predicated region fallthrough
CT: control target
= control target key end

     0   :  { %s2216_s21 = smov 0   ;;  %s2518_s0 = inlined_call_operand.vmem [shape: f32[2,17,17,3], index: 0, kind: input, shape index: {}]   ;;  %s2519_s1 = inlined_call_operand.vmem [shape: f32[2,17,17,3], index: 1, kind: input, shape index: {}]   ;;  %s2520_s2 = inlined_call_operand.vmem [shape: f32[2,17,17,3], index: 2, kind: input, shape index: {}]   ;;  %s2521_s3 = inlined_call_operand.vmem [shape: f32[2,17,17,3], index: 3, kind: input, shape index: {}]   ;;  %s2522_s4 = inlined_call_operand.vmem [shape: f32[16,3,8], index: 4, kind: input, shape index: {}]   ;;  %s2523_s5 = inlined_call_operand.vmem [shape: f32[1,8], index: 5, kind: input, shape index: {}]   ;;  %s2524_s6 = inlined_call_operand.vmem [shape: f32[2,16,16,8], index: 6, kind: output, shape index: {}]  }
   0x1 LB: > { %s1914_s22 = sadd.s32 4294967295, %s2175_s21   ;;  %p1918_p0 = scmp.ge.s32.totalorder %s2175_s21, 1  ;;  %s2175_s21 = sphi %s2216_s21, %s16_s21  }
   0x2   : > { %p242_p1 = scmp.lt.s32.totalorder %s2175_s21, 3 }
   0x4   : > { %p243_p2 = pnand %p1918_p0, %p242_p1 }
   0x5   : > { %p287_p3 = scmp.lt.s32.totalorder (!%p243_p2), %s1914_s22, 1  ;;  %v2227_v0 = vld [vmem:[%s2522_s4] sm:$0x7] (!%p243_p2)  ;;  %v2232_v1 = vld [vmem:[%s2522_s4 + $0x4] sm:$0x7] (!%p243_p2)  ;;  %s2332_s7 = smov (!%p243_p2), 0  }
   0x6   : > { %246 = sbr.rel (%p243_p2) target bundleno = 304 (0x130), region = 44  ;;  %v2237_v2 = vld [vmem:[%s2522_s4 + $0x8] sm:$0x7] (!%p243_p2)  ;;  %v2242_v3 = vld [vmem:[%s2522_s4 + $0xc] sm:$0x7] (!%p243_p2) }
   0x7   : > { %v2247_v4 = vld [vmem:[%s2522_s4 + $0x10] sm:$0x7] (!%p243_p2)  ;;  %v2252_v5 = vld [vmem:[%s2522_s4 + $0x14] sm:$0x7] (!%p243_p2)  ;;  %v2257_v6 = vld [vmem:[%s2522_s4 + $0x18] sm:$0x7] (!%p243_p2) }
   0x8   : > { %v2262_v7 = vld [vmem:[%s2522_s4 + $0x1c] sm:$0x7] (!%p243_p2)  ;;  %v2267_v8 = vld [vmem:[%s2522_s4 + $0x20] sm:$0x7] (!%p243_p2)  ;;  %v2272_v9 = vld [vmem:[%s2522_s4 + $0x24] sm:$0x7] (!%p243_p2) }
   0x9   : > { %v2279_v10 = vld [vmem:[%s2522_s4 + $0x28] sm:$0x7] (!%p243_p2)  ;;  %v2284_v11 = vld [vmem:[%s2522_s4 + $0x2c] sm:$0x7] (!%p243_p2)  ;;  %v2294_v12 = vld [vmem:[%s2522_s4 + $0x30] sm:$0x7] (!%p243_p2) }
   0xa   : > { %v2299_v13 = vld [vmem:[%s2522_s4 + $0x34] sm:$0x7] (!%p243_p2)  ;;  %v2304_v14 = vld [vmem:[%s2522_s4 + $0x38] sm:$0x7] (!%p243_p2)  ;;  %v2317_v15 = vld [vmem:[%s2522_s4 + $0x3c] sm:$0x7] (!%p243_p2) }
   0xb   : > { %v2322_v16 = vld [vmem:[%s2523_s5] ss:$0 sm:$0xff] (!%p243_p2) }
   0xd   : > { %s2526_s22 = smov (!%p287_p3, %s1914_s22), 1 }
   0xe   : > { %s2274_s19 = smul.u32 408, %s2526_s22  ;;  %s1989_s20 = sshll.u32 %s2526_s22, 8 }
   0xf   : > { %s2289_s29 = scalar_lea.vmem %s2524_s6, %s1989_s20 }
  0x10   : > { %s291_s13 = scalar_lea.vmem %s2518_s0, %s2274_s19  ;;  %s296_s16 = scalar_lea.vmem %s2519_s1, %s2274_s19 }
  0x11   : > { %s301_s26 = scalar_lea.vmem %s2520_s2, %s2274_s19  ;;  %s306_s30 = scalar_lea.vmem %s2521_s3, %s2274_s19 }
  0x12 LB: >> { %vm354_vm0 = vcmask 1042432   ;;  %s2344_s22 = smul.u32 24, %s2179_s7  ;;  %vm349_vm1 = vcmask 23552   ;;  %vm343_vm2 = vcmask 1046528   ;;  %s1986_s25 = sshll.u32 %s2179_s7, 4  ;;  %vm1793_vm4 = vcmask 64512   ;;  %s2179_s7 = sphi %s2332_s7, %s334_s7  }
  0x13   : >> { %2078 = vmatprep.subr.msk.mxu0 %vm354_vm0, %v2267_v8  ;;  %2038 = vmatprep.subr.msk.mxu1 %vm354_vm0, %v2232_v1  ;;  %s1792_s27 = scalar_lea.vmem %s2289_s29, %s1986_s25  ;;  %s334_s7 = sadd.s32 1, %s2179_s7  }
  0x14   : >> { %2079 = vmatpush3.msk.msra.mxu0 %vm354_vm0, %v2267_v8  ;;  %2039 = vmatpush3.msk.msra.mxu1 %vm354_vm0, %v2232_v1  ;;  %s2358_s10 = scalar_lea.vmem %s301_s26, %s2344_s22  ;;  %s2366_s14 = scalar_lea.vmem %s291_s13, %s2344_s22 }
  0x15   : >> { %2043 = vmatprep.subr.msk.mxu1 %vm354_vm0, %v2227_v0  ;;  %2083 = vmatprep.subr.msk.mxu0 %vm354_vm0, %v2272_v9  ;;  %v1058_v17 = vld [vmem:[%s2358_s10] sm:$0xff]  ;;  %v1059_v18 = vld [vmem:[%s2358_s10 + $0x8] sm:$0xff]  ;;  %v339_v24 = vld [vmem:[%s2366_s14 + $0x10] sm:$0x1]  ;;  %s2424_s18 = scalar_lea.vmem %s306_s30, %s2344_s22  ;;  %s2440_s24 = scalar_lea.vmem %s296_s16, %s2344_s22 }
  0x16   : >> { %v337_v19 = vld [vmem:[%s2366_s14] sm:$0xff]  ;;  %2080 = vmatprep.mubr.msk.f32.mxu0 %vm349_vm1, %v1058_v17  ;;  %v1148_v20 = vrot.slane %v1058_v17, 1  ;;  %v1149_v21 = vrot.slane %v1059_v18, 1  ;;  %v338_v22 = vld [vmem:[%s2366_s14 + $0x8] sm:$0xff]  ;;  %v347_v26 = vrot.slane %v339_v24, 1  ;;  %v1961_v33 = vld [vmem:[%s2358_s10 + $0x18] sm:$0xff] }
  0x17   : >> { %v344_v23 = vrot.slane %v337_v19, 1  ;;  %2081 = vmatmul.mubr.msk.f32.vlgmr.msra.gmra.mrb[0].mxu0 %vm349_vm1, %v1059_v18  ;;  %v345_v25 = vrot.slane %v338_v22, 1  ;;  %v1060_v27 = vld [vmem:[%s2358_s10 + $0x10] sm:$0x1]  ;;  %v1962_v34 = vld [vmem:[%s2358_s10 + $0x20] sm:$0xff]  ;;  %v1328_v35 = vrot.slane %v1961_v33, 1 }
  0x18   : >> { %2084 = vmatpush3.msk.msra.mxu0 %vm354_vm0, %v2272_v9  ;;  %v1150_v28 = vsel %vm343_vm2, %v1148_v20, %v1149_v21  ;;  %v1151_v29 = vrot.slane %v1060_v27, 1  ;;  %v1329_v36 = vrot.slane %v1962_v34, 1  ;;  %v1931_v37 = vld [vmem:[%s2366_s14 + $0x18] sm:$0xff]  ;;  %v1932_v38 = vld [vmem:[%s2366_s14 + $0x20] sm:$0xff]  ;;  %v1963_v42 = vld [vmem:[%s2358_s10 + $0x28] sm:$0x1] }
  0x19   : >> { %v346_v30 = vsel %vm343_vm2, %v344_v23, %v345_v25  ;;  %v348_v31 = vsel %vm343_vm2, %v345_v25, %v347_v26  ;;  %2085 = vmatprep.mubr.msk.f32.mxu0 %vm349_vm1, %v1150_v28  ;;  %2088 = vmatprep.subr.msk.mxu0 %vm354_vm0, %v2279_v10  ;;  %v608_v39 = vrot.slane %v1931_v37, 1  ;;  %v609_v40 = vrot.slane %v1932_v38, 1  ;;  %v1933_v45 = vld [vmem:[%s2366_s14 + $0x28] sm:$0x1]  ;;  %v1418_v48 = vld [vmem:[%s2424_s18] sm:$0xff]  ;;  %v1976_v17 = vld [vmem:[%s2424_s18 + $0x18] sm:$0xff] }
  0x1a   : >> { %2040 = vmatprep.mubr.msk.f32.mxu1 %vm349_vm1, %v346_v30  ;;  %v1152_v32 = vsel %vm343_vm2, %v1149_v21, %v1151_v29  ;;  %v1330_v41 = vsel %vm343_vm2, %v1328_v35, %v1329_v36  ;;  %v1331_v43 = vrot.slane %v1963_v42, 1  ;;  %v611_v47 = vrot.slane %v1933_v45, 1  ;;  %v1419_v50 = vld [vmem:[%s2424_s18 + $0x8] sm:$0xff]  ;;  %v698_v53 = vld [vmem:[%s2440_s24] sm:$0xff]  ;;  %v1420_v58 = vld [vmem:[%s2424_s18 + $0x10] sm:$0x1] }
  0x1b   : >> { %2041 = vmatmul.mubr.msk.f32.vlgmr.msra.gmra.mrb[0].mxu1 %vm349_vm1, %v348_v31  ;;  %v610_v44 = vsel %vm343_vm2, %v608_v39, %v609_v40  ;;  %v1508_v51 = vrot.slane %v1418_v48, 1  ;;  %v1509_v52 = vrot.slane %v1419_v50, 1  ;;  %v699_v54 = vld [vmem:[%s2440_s24 + $0x8] sm:$0xff]  ;;  %v788_v55 = vrot.slane %v698_v53, 1  ;;  %v700_v61 = vld [vmem:[%s2440_s24 + $0x10] sm:$0x1] }
  0x1c   : >> { %2044 = vmatpush3.msk.msra.mxu1 %vm354_vm0, %v2227_v0  ;;  %2045 = vmatprep.mubr.msk.f32.mxu1 %vm349_vm1, %v337_v19  ;;  %v1332_v46 = vsel %vm343_vm2, %v1329_v36, %v1331_v43  ;;  %v612_v49 = vsel %vm343_vm2, %v609_v40, %v611_v47  ;;  %v789_v56 = vrot.slane %v699_v54, 1  ;;  %v1511_v59 = vrot.slane %v1420_v58, 1  ;;  %v1977_v19 = vld [vmem:[%s2424_s18 + $0x20] sm:$0xff]  ;;  %v1978_v27 = vld [vmem:[%s2424_s18 + $0x28] sm:$0x1]  ;;  %p331_p4 = scmp.ge.s32.totalorder %s334_s7, 16  }
  0x1d   : >> { %2048 = vmatprep.subr.msk.mxu1 %vm354_vm0, %v2237_v2  ;;  %v1510_v57 = vsel %vm343_vm2, %v1508_v51, %v1509_v52  ;;  %v791_v63 = vrot.slane %v700_v61, 1  ;;  %v1688_v20 = vrot.slane %v1976_v17, 1  ;;  %v1689_v21 = vrot.slane %v1977_v19, 1  ;;  %v1947_v23 = vld [vmem:[%s2440_s24 + $0x20] sm:$0xff]  ;;  %v1948_v30 = vld [vmem:[%s2440_s24 + $0x28] sm:$0x1] }
  0x1e   : >> { %v790_v60 = vsel %vm343_vm2, %v788_v55, %v789_v56  ;;  %v1512_v62 = vsel %vm343_vm2, %v1509_v52, %v1511_v59  ;;  %v969_v25 = vrot.slane %v1947_v23, 1  ;;  %v1691_v28 = vrot.slane %v1978_v27, 1 }
  0x1f   : >> { %2086 = vmatmul.mubr.msk.f32.vlgmr.msra.gmra.mrb[0].mxu0 %vm349_vm1, %v1152_v32  ;;  %v792_v18 = vsel %vm343_vm2, %v789_v56, %v791_v63  ;;  %v1690_v26 = vsel %vm343_vm2, %v1688_v20, %v1689_v21  ;;  %v971_v32 = vrot.slane %v1948_v30, 1 }
  0x20   : >> { %2089 = vmatpush3.msk.msra.mxu0 %vm354_vm0, %v2279_v10  ;;  %2090 = vmatprep.mubr.msk.f32.mxu0 %vm349_vm1, %v1961_v33  ;;  %v1692_v31 = vsel %vm343_vm2, %v1689_v21, %v1691_v28 }
  0x21   : >> { %2093 = vmatprep.subr.msk.mxu0 %vm354_vm0, %v2284_v11  ;;  %v972_v33 = vsel %vm343_vm2, %v969_v25, %v971_v32 }
  0x23   : >> { %2046 = vmatmul.mubr.msk.f32.vlgmr.msra.gmra.mrb[0].mxu1 %vm349_vm1, %v338_v22  ;;  %v1946_v22 = vld [vmem:[%s2440_s24 + $0x18] sm:$0xff] }
  0x24   : >> { %2049 = vmatpush3.msk.msra.mxu1 %vm354_vm0, %v2237_v2  ;;  %2050 = vmatprep.mubr.msk.f32.mxu1 %vm349_vm1, %v1931_v37  ;;  %v968_v24 = vrot.slane %v1946_v22, 1 }
  0x25   : >> { %2053 = vmatprep.subr.msk.mxu1 %vm354_vm0, %v2242_v3 }
  0x26   : >> { %v970_v29 = vsel %vm343_vm2, %v968_v24, %v969_v25 }
  0x27   : >> { %2091 = vmatmul.mubr.msk.f32.vlgmr.msra.gmra.mrb[0].mxu0 %vm349_vm1, %v1962_v34 }
  0x28   : >> { %2094 = vmatpush3.msk.msra.mxu0 %vm354_vm0, %v2284_v11  ;;  %2095 = vmatprep.mubr.msk.f32.mxu0 %vm349_vm1, %v1330_v41 }
  0x29   : >> { %2098 = vmatprep.subr.msk.mxu0 %vm354_vm0, %v2294_v12 }
  0x2b   : >> { %2051 = vmatmul.mubr.msk.f32.vlgmr.msra.gmra.mrb[0].mxu1 %vm349_vm1, %v1932_v38 }
  0x2c   : >> { %2054 = vmatpush3.msk.msra.mxu1 %vm354_vm0, %v2242_v3  ;;  %2055 = vmatprep.mubr.msk.f32.mxu1 %vm349_vm1, %v610_v44 }
  0x2d   : >> { %2058 = vmatprep.subr.msk.mxu1 %vm354_vm0, %v2247_v4 }
  0x2f   : >> { %2096 = vmatmul.mubr.msk.f32.vlgmr.msra.gmra.mrb[0].mxu0 %vm349_vm1, %v1332_v46 }
  0x30   : >> { %2099 = vmatpush3.msk.msra.mxu0 %vm354_vm0, %v2294_v12  ;;  %2100 = vmatprep.mubr.msk.f32.mxu0 %vm349_vm1, %v1418_v48 }
  0x31   : >> { %2103 = vmatprep.subr.msk.mxu0 %vm354_vm0, %v2299_v13 }
  0x33   : >> { %2056 = vmatmul.mubr.msk.f32.vlgmr.msra.gmra.mrb[0].mxu1 %vm349_vm1, %v612_v49 }
  0x34   : >> { %2059 = vmatpush3.msk.msra.mxu1 %vm354_vm0, %v2247_v4  ;;  %2060 = vmatprep.mubr.msk.f32.mxu1 %vm349_vm1, %v698_v53 }
  0x35   : >> { %2063 = vmatprep.subr.msk.mxu1 %vm354_vm0, %v2252_v5 }
  0x37   : >> { %2101 = vmatmul.mubr.msk.f32.vlgmr.msra.gmra.mrb[0].mxu0 %vm349_vm1, %v1419_v50 }
  0x38   : >> { %2104 = vmatpush3.msk.msra.mxu0 %vm354_vm0, %v2299_v13  ;;  %2105 = vmatprep.mubr.msk.f32.mxu0 %vm349_vm1, %v1510_v57 }
  0x39   : >> { %2108 = vmatprep.subr.msk.mxu0 %vm354_vm0, %v2304_v14 }
  0x3b   : >> { %2061 = vmatmul.mubr.msk.f32.vlgmr.msra.gmra.mrb[0].mxu1 %vm349_vm1, %v699_v54 }
  0x3c   : >> { %2064 = vmatpush3.msk.msra.mxu1 %vm354_vm0, %v2252_v5  ;;  %2065 = vmatprep.mubr.msk.f32.mxu1 %vm349_vm1, %v790_v60 }
  0x3d   : >> { %2068 = vmatprep.subr.msk.mxu1 %vm354_vm0, %v2257_v6 }
  0x3f   : >> { %2106 = vmatmul.mubr.msk.f32.vlgmr.msra.gmra.mrb[0].mxu0 %vm349_vm1, %v1512_v62 }
  0x40   : >> { %2109 = vmatpush3.msk.msra.mxu0 %vm354_vm0, %v2304_v14  ;;  %2110 = vmatprep.mubr.msk.f32.mxu0 %vm349_vm1, %v1976_v17 }
  0x41   : >> { %2113 = vmatprep.subr.msk.mxu0 %vm354_vm0, %v2317_v15 }
  0x43   : >> { %2066 = vmatmul.mubr.msk.f32.vlgmr.msra.gmra.mrb[0].mxu1 %vm349_vm1, %v792_v18 }
  0x44   : >> { %2069 = vmatpush3.msk.msra.mxu1 %vm354_vm0, %v2257_v6  ;;  %2070 = vmatprep.mubr.msk.f32.mxu1 %vm349_vm1, %v1946_v22 }
  0x45   : >> { %2073 = vmatprep.subr.msk.mxu1 %vm354_vm0, %v2262_v7 }
  0x47   : >> { %2111 = vmatmul.mubr.msk.f32.vlgmr.msra.gmra.mrb[0].mxu0 %vm349_vm1, %v1977_v19 }
  0x48   : >> { %2114 = vmatpush3.msk.msra.mxu0 %vm354_vm0, %v2317_v15  ;;  %2115 = vmatprep.mubr.msk.f32.mxu0 %vm349_vm1, %v1690_v26 }
  0x4b   : >> { %2071 = vmatmul.mubr.msk.f32.vlgmr.msra.gmra.mrb[0].mxu1 %vm349_vm1, %v1947_v23 }
  0x4c   : >> { %2074 = vmatpush3.msk.msra.mxu1 %vm354_vm0, %v2262_v7  ;;  %2075 = vmatprep.mubr.msk.f32.mxu1 %vm349_vm1, %v970_v29 }
  0x4f   : >> { %2116 = vmatmul.mubr.msk.f32.vlgmr.msra.gmra.mrb[0].mxu0 %vm349_vm1, %v1692_v31 }
  0x53   : >> { %2076 = vmatmul.mubr.msk.f32.vlgmr.msra.gmra.mrb[0].mxu1 %vm349_vm1, %v972_v33 }
 0x122   : >> { %v2117_v34 = vpop.f32.mrb[0].mxu0 }
 0x123   : >> { %v1766_v35 = vpop.f32.mrb[1].mxu0 }
 0x126   : >> { %v2077_v36 = vpop.f32.mrb[0].mxu1 }
 0x127   : >> { %v2118_v37 = vadd.f32 %v2117_v34, %v2077_v36  ;;  %v1046_v38 = vpop.f32.mrb[1].mxu1 }
 0x128   : >> { %v2119_v39 = vadd.f32 %v1766_v35, %v1046_v38 }
 0x129   : >> { %v1784_v40 = vadd.f32 %v2118_v37, %v2322_v16  ;;  %333 = sbr.rel (!%p331_p4) target bundleno = 18 (0x12), region = 99 }
 0x12a   : >> { %v1783_v41 = vadd.f32 %v2119_v39, %v2322_v16 }
 0x12b   : >> { %vm1786_vm3 = vcmp.ge.f32.partialorder %v1784_v40, 0.0  ;;  %v1788_v42 = vmul.f32 0.2, %v1784_v40 }
 0x12c   : >> { %vm1785_vm5 = vcmp.ge.f32.partialorder %v1783_v41, 0.0  ;;  %v1787_v43 = vmul.f32 0.2, %v1783_v41 }
 0x12d   : >> { %v1790_v44 = vsel %vm1786_vm3, %v1784_v40, %v1788_v42 }
 0x12e   : >> { %1795 = vst.msk [vmem:[%s1792_s27 + $0x8] sm:$0xff] %vm1793_vm4, %v1790_v44  ;;  %v1789_v45 = vsel %vm1785_vm5, %v1783_v41, %v1787_v43 }
 0x12f   : >> { %1794 = vst.msk [vmem:[%s1792_s27] sm:$0xff] %vm1793_vm4, %v1789_v45 }
 0x130 PF: > { %s16_s21 = sadd.s32 1, %s2175_s21  }
 0x131   : > { %p13_p5 = scmp.ge.s32.totalorder %s16_s21, 4  }
 0x133   :  { %15 = sbr.rel (!%p13_p5) target bundleno = 1 (0x1), region = 110 }

</bundles_post_ra>
